<compile_context>
chip_gen: v7x
topology: tpu7x:2x2x1
jax: 0.10.0
libtpu: 0.0.40
codegen_flags: <defaults>
</compile_context>

<pallas_src>
import functools

import jax
import jax.numpy as jnp
from jax.experimental import pallas as pl
from jax.experimental.pallas import tpu as pltpu


# ----------------------------------------------------------------------------
# Generation-aware tile budget / scoped-VMEM limit
# ----------------------------------------------------------------------------
@functools.lru_cache(maxsize=1)
def _gen_params():
    """Returns (per-block tile byte budget, vmem_limit_bytes or None)."""
    try:
        kind = jax.devices()[0].device_kind.lower()
    except Exception:                      # defensive: never fail tile planning
        kind = ""
    if "v6" in kind:                       # v6e: 128 MiB physical VMEM
        return 4 * 1024 * 1024, 64 * 1024 * 1024
    if "v7" in kind or "7x" in kind:       # v7x: only 64 MiB per TensorCore
        return 4 * 1024 * 1024, 48 * 1024 * 1024
    # v5e (and unknown): stay inside the 16 MiB default scoped-VMEM limit.
    return 2 * 1024 * 1024, None


def _rup(a, m):
    return -(-a // m) * m


def _sublane(dtype):
    # Sublane packing: 8 for 4-byte, 16 for 2-byte, 32 for 1-byte dtypes.
    return max(8, 32 // jnp.dtype(dtype).itemsize)


# ----------------------------------------------------------------------------
# Tile selection for a logical (R rows, L lanes) view.
# ----------------------------------------------------------------------------
_MIN_STEPS = 8                 # enough grid steps for DMA/compute overlap
_MIN_TILE_BYTES = 256 * 1024   # don't shrink below this (per-step overhead)


def _pick_tiles(R, L, dtype, *, target_bytes, lead="rows"):
    """Pick (tile_r, tile_l): lane-dense, budget-limited, pipeline-friendly."""
    itemsize = jnp.dtype(dtype).itemsize
    sub = _sublane(dtype)

    # --- budget-limited starting point --------------------------------------
    max_lanes = max(128, (target_bytes // (sub * itemsize)) // 128 * 128)
    tile_l = L if L <= max_lanes else max_lanes
    row_budget = max(sub, (target_bytes // max(1, tile_l * itemsize)) // sub * sub)
    tile_r = R if R <= row_budget else row_budget

    # --- >=2 blocks along the leading ("parallel") axis: v7x has 2 TCs ------
    if lead == "rows" and R >= 2 * sub:
        tile_r = min(tile_r, _rup(pl.cdiv(R, 2), sub))
    if lead == "lanes" and L >= 2 * 128:
        tile_l = min(tile_l, _rup(pl.cdiv(L, 2), 128))

    # --- enough grid steps to pipeline (never a single serialized step) -----
    def _shrink(axis):
        nonlocal tile_r, tile_l
        if axis == "rows" and tile_r > sub:
            tile_r = max(sub, _rup(pl.cdiv(tile_r, 2), sub))
            return True
        if axis == "lanes" and tile_l > 128:
            tile_l = max(128, _rup(pl.cdiv(tile_l, 2), 128))
            return True
        return False

    order = ("rows", "lanes") if lead == "rows" else ("lanes", "rows")
    while (pl.cdiv(R, tile_r) * pl.cdiv(L, tile_l) < _MIN_STEPS
           and tile_r * tile_l * itemsize >= 2 * _MIN_TILE_BYTES):
        if not (_shrink(order[0]) or _shrink(order[1])):
            break
    return tile_r, tile_l


# ----------------------------------------------------------------------------
# Kernel 1: per-row (=> per-channel, per-batch) min/max ('monitor' mode)
# ----------------------------------------------------------------------------
def _fold_minmax(x, mx_ref, mn_ref, n_lanes, acc_w):
    """Fold the first `n_lanes` (static) lanes of x into (rows, acc_w) f32
    accumulators using element-wise VPU ops only (no per-step XLU reduce)."""
    for s in range(0, n_lanes, acc_w):
        w = min(acc_w, n_lanes - s)
        c = x[:, s:s + w]
        if w == acc_w:
            mx_ref[...] = jnp.maximum(mx_ref[...], c)
            mn_ref[...] = jnp.minimum(mn_ref[...], c)
        else:  # single partial tail chunk (static width)
            mx_ref[:, :w] = jnp.maximum(mx_ref[:, :w], c)
            mn_ref[:, :w] = jnp.minimum(mn_ref[:, :w], c)


def _rowminmax_kernel(x_ref, rmax_ref, rmin_ref, mx_acc, mn_acc, *,
                      rem_hw, acc_w):
    j = pl.program_id(1)               # spatial (lane) accumulation axis
    nj = pl.num_programs(1)

    @pl.when(j == 0)
    def _init():
        mx_acc[...] = jnp.full(mx_acc.shape, -jnp.inf, mx_acc.dtype)
        mn_acc[...] = jnp.full(mn_acc.shape, jnp.inf, mn_acc.dtype)

    x = x_ref[...]                     # (tile_r, tile_hw); bf16 promotes to f32
    tile_hw = x.shape[1]

    if rem_hw == 0:                    # every lane block fully valid
        _fold_minmax(x, mx_acc, mn_acc, tile_hw, acc_w)
    else:
        # Only the last lane block is partially valid; interior blocks pay no
        # masking cost at all.  (Pallas pads partial blocks -- the valid data
        # is the first `rem_hw` lanes of the block; padded lanes are skipped.)
        @pl.when(j < nj - 1)
        def _interior():
            _fold_minmax(x, mx_acc, mn_acc, tile_hw, acc_w)

        @pl.when(j == nj - 1)
        def _boundary():
            _fold_minmax(x, mx_acc, mn_acc, rem_hw, acc_w)

    @pl.when(j == nj - 1)
    def _finalize():                   # single cross-lane (XLU) reduce per row tile
        rmax_ref[...] = jnp.max(mx_acc[...], axis=1, keepdims=True)
        rmin_ref[...] = jnp.min(mn_acc[...], axis=1, keepdims=True)


def channel_minmax(x, prev_max=None, prev_min=None):
    """x: (N, C, H, W) floating. Returns running per-channel (maxQ, minQ), each (C,)."""
    if not jnp.issubdtype(x.dtype, jnp.floating):
        raise TypeError("channel_minmax requires a floating-point input "
                        f"(got {x.dtype}); +/-inf identities are used.")
    N, C, H, W = x.shape
    R, HW = N * C, H * W
    x2d = x.reshape(R, HW)             # free reshape of contiguous NCHW

    budget, vmem_limit = _gen_params()
    tile_r, tile_hw = _pick_tiles(R, HW, x.dtype, target_bytes=budget, lead="rows")
    grid = (pl.cdiv(R, tile_r), pl.cdiv(HW, tile_hw))
    rem_hw = HW % tile_hw              # static; 0 when lane blocks divide HW
    acc_w = min(1024, _rup(tile_hw, 128))

    kern = functools.partial(_rowminmax_kernel, rem_hw=rem_hw, acc_w=acc_w)
    # NOTE: padded boundary *row* blocks produce garbage per-row outputs which
    # Pallas discards on the masked store of the partial output block.
    rmax, rmin = pl.pallas_call(
        kern,
        out_shape=(jax.ShapeDtypeStruct((R, 1), jnp.float32),
                   jax.ShapeDtypeStruct((R, 1), jnp.float32)),
        grid=grid,
        in_specs=[pl.BlockSpec((tile_r, tile_hw), lambda i, j: (i, j))],
        out_specs=(pl.BlockSpec((tile_r, 1), lambda i, j: (i, 0)),
                   pl.BlockSpec((tile_r, 1), lambda i, j: (i, 0))),
        scratch_shapes=[pltpu.VMEM((tile_r, acc_w), jnp.float32),
                        pltpu.VMEM((tile_r, acc_w), jnp.float32)],
        compiler_params=pltpu.CompilerParams(
            dimension_semantics=("parallel", "arbitrary"),
            vmem_limit_bytes=vmem_limit),
    )(x2d)

    # Tiny (N, C) epilogue: fold batch rows per channel + merge running state.
    bmax = jnp.max(rmax.reshape(N, C), axis=0).astype(x.dtype)
    bmin = jnp.min(rmin.reshape(N, C), axis=0).astype(x.dtype)
    if prev_max is not None:
        bmax = jnp.maximum(bmax, prev_max)
    if prev_min is not None:
        bmin = jnp.minimum(bmin, prev_min)
    return bmax, bmin


# ----------------------------------------------------------------------------
# Kernel 2: per-channel clamp ('org_bound' / 'limit_bound')
# ----------------------------------------------------------------------------
def _clamp_kernel(x_ref, lo_ref, hi_ref, o_ref):
    # Compare in f32 (bounds are f32); max-then-min keeps NaN propagation
    # identical to torch.clamp.
    x = x_ref[...].astype(jnp.float32)
    o_ref[...] = jnp.minimum(jnp.maximum(x, lo_ref[...]), hi_ref[...]).astype(o_ref.dtype)


def channel_clamp(x, minq, maxq, limit=1.0, donate=False):
    """x: (N, C, H, W); minq/maxq: (C,). Returns clamped NCHW array."""
    N, C, H, W = x.shape
    HW = H * W
    dt = x.dtype
    budget, vmem_limit = _gen_params()

    # Fold `limit` into the bounds once, in float32.
    lo_c = jnp.asarray(minq, jnp.float32) * jnp.float32(limit)   # (C,)
    hi_c = jnp.asarray(maxq, jnp.float32) * jnp.float32(limit)

    if HW >= 512 and HW % 128 == 0:
        # Layout A: rows = (batch, channel) pairs, lanes = H*W (lane-dense);
        # per-row bounds (R, 1), resident across the inner spatial axis.
        R, L = N * C, HW
        x2d = x.reshape(R, L)
        lo = jnp.tile(lo_c, N).reshape(R, 1)
        hi = jnp.tile(hi_c, N).reshape(R, 1)
        tile_r, tile_l = _pick_tiles(R, L, dt, target_bytes=budget, lead="rows")
        grid = (pl.cdiv(R, tile_r), pl.cdiv(L, tile_l))
        x_spec = pl.BlockSpec((tile_r, tile_l), lambda i, j: (i, j))
        b_spec = pl.BlockSpec((tile_r, 1), lambda i, j: (i, 0))     # no re-DMA over j
        o_spec = pl.BlockSpec((tile_r, tile_l), lambda i, j: (i, j))
    else:
        # Layout B (small or odd H*W): rows = batch, lanes = C*H*W (lane-dense);
        # per-lane bounds (1, C*H*W), resident across the inner row axis.
        R, L = N, C * HW
        x2d = x.reshape(R, L)
        lo = jnp.repeat(lo_c, HW).reshape(1, L)
        hi = jnp.repeat(hi_c, HW).reshape(1, L)
        tile_r, tile_l = _pick_tiles(R, L, dt, target_bytes=budget, lead="lanes")
        grid = (pl.cdiv(L, tile_l), pl.cdiv(R, tile_r))   # lane blocks on the outer axis
        x_spec = pl.BlockSpec((tile_r, tile_l), lambda j, i: (i, j))
        b_spec = pl.BlockSpec((1, tile_l), lambda j, i: (0, j))     # no re-DMA over i
        o_spec = pl.BlockSpec((tile_r, tile_l), lambda j, i: (i, j))

    y2d = pl.pallas_call(
        _clamp_kernel,
        out_shape=jax.ShapeDtypeStruct((R, L), dt),
        grid=grid,
        in_specs=[x_spec, b_spec, b_spec],
        out_specs=o_spec,
        input_output_aliases=({0: 0} if donate else {}),
        compiler_params=pltpu.CompilerParams(
            dimension_semantics=("parallel", "parallel"),
            vmem_limit_bytes=vmem_limit),
    )(x2d, lo, hi)
    return y2d.reshape(N, C, H, W)


# ----------------------------------------------------------------------------
# Module-level glue (state handling)
# ----------------------------------------------------------------------------
class SimpleLimit:
    """JAX/Pallas port of quant_acts.SimpleLimit (forward pass only)."""
    # TODO(synk): save_min_max/load_min_max (file I/O) and the allLayer global
    # registry are host-side bookkeeping with no Pallas equivalent; omitted.

    def __init__(self, mode='forward', name='', limit=0.9):
        self.mode = mode
        self.name = name
        self.maxQ = None
        self.minQ = None
        self.limit = limit   # set externally in the original module

    def setMode(self, new_mode):
        self.mode = new_mode

    def __call__(self, x, donate=False):
        if self.mode in ('forward', 'quan'):
            return x
        if self.mode == 'monitor':
            # TODO(synk): eager, stateful update; under jax.jit call
            # channel_minmax directly and thread (maxQ, minQ) functionally.
            self.maxQ, self.minQ = channel_minmax(x, self.maxQ, self.minQ)
            return x
        if self.mode == 'org_bound':
            return channel_clamp(x, self.minQ, self.maxQ, 1.0, donate=donate)
        if self.mode == 'limit_bound':
            return channel_clamp(x, self.minQ, self.maxQ, self.limit, donate=donate)
        raise ValueError(f"unknown mode {self.mode}")


# ----------------------------------------------------------------------------
if __name__ == "__main__":
    key = jax.random.PRNGKey(0)

    # --- primary small test: N=2, C=4, H=W=16 (f32) --------------------------
    N, C, H, W = 2, 4, 16, 16
    x = jax.random.normal(key, (N, C, H, W), dtype=jnp.float32) * 3.0

    layer = SimpleLimit(mode='forward', name='act0', limit=0.9)

    y_fwd = layer(x)
    jax.block_until_ready(y_fwd)
    assert jnp.array_equal(y_fwd, x)

    layer.setMode('monitor')
    _ = layer(x)
    _ = layer(x * 0.5)
    jax.block_until_ready((layer.maxQ, layer.minQ))
    ref_max = jnp.maximum(jnp.max(x, axis=(0, 2, 3)), jnp.max(x * 0.5, axis=(0, 2, 3)))
    ref_min = jnp.minimum(jnp.min(x, axis=(0, 2, 3)), jnp.min(x * 0.5, axis=(0, 2, 3)))
    assert jnp.allclose(layer.maxQ, ref_max), (layer.maxQ, ref_max)
    assert jnp.allclose(layer.minQ, ref_min), (layer.minQ, ref_min)

    layer.setMode('org_bound')
    x_test = x * 2.0
    y_org = layer(x_test)
    jax.block_until_ready(y_org)
    ref_org = jnp.clip(x_test,
                       layer.minQ[None, :, None, None],
                       layer.maxQ[None, :, None, None])
    assert jnp.allclose(y_org, ref_org)

    layer.setMode('limit_bound')
    y_lim = layer(x_test)
    jax.block_until_ready(y_lim)
    ref_lim = jnp.clip(x_test,
                       layer.minQ[None, :, None, None] * layer.limit,
                       layer.maxQ[None, :, None, None] * layer.limit)
    assert jnp.allclose(y_lim, ref_lim)

    # --- layout-A path (HW multiple of 128, >=512) + 2 row blocks ------------
    x2 = jax.random.normal(jax.random.PRNGKey(1), (2, 8, 32, 32), jnp.float32)
    mx2, mn2 = channel_minmax(x2)
    y2 = channel_clamp(x2 * 1.7, mn2, mx2, 0.8)
    jax.block_until_ready(y2)
    assert jnp.allclose(mx2, jnp.max(x2, axis=(0, 2, 3)))
    assert jnp.allclose(mn2, jnp.min(x2, axis=(0, 2, 3)))
    assert jnp.allclose(y2, jnp.clip(x2 * 1.7,
                                     mn2[None, :, None, None] * 0.8,
                                     mx2[None, :, None, None] * 0.8))

    # --- odd shapes (HW=400, C=5, R=15) -> layout B + partial lane chunks ----
    x3 = jax.random.normal(jax.random.PRNGKey(2), (3, 5, 20, 20), jnp.float32)
    mx3, mn3 = channel_minmax(x3)
    y3 = channel_clamp(x3 * 2.0, mn3, mx3, 1.0)
    jax.block_until_ready(y3)
    assert jnp.allclose(mx3, jnp.max(x3, axis=(0, 2, 3)))
    assert jnp.allclose(mn3, jnp.min(x3, axis=(0, 2, 3)))
    assert jnp.allclose(y3, jnp.clip(x3 * 2.0,
                                     mn3[None, :, None, None],
                                     mx3[None, :, None, None]))

    # --- bf16 activations (sublane packing = 16, f32 accumulation) -----------
    xb = (jax.random.normal(jax.random.PRNGKey(3), (2, 4, 16, 16), jnp.float32)
          * 2.0).astype(jnp.bfloat16)
    mxb, mnb = channel_minmax(xb)
    yb = channel_clamp(xb, mnb, mxb, 0.5)
    jax.block_until_ready(yb)
    assert jnp.allclose(mxb.astype(jnp.float32), jnp.max(xb.astype(jnp.float32), axis=(0, 2, 3)))
    ref_b = jnp.clip(xb.astype(jnp.float32),
                     mnb.astype(jnp.float32)[None, :, None, None] * 0.5,
                     mxb.astype(jnp.float32)[None, :, None, None] * 0.5).astype(jnp.bfloat16)
    assert jnp.allclose(yb.astype(jnp.float32), ref_b.astype(jnp.float32))

    print("KERNEL_OK")
</pallas_src>

<mosaic_0001>
module attributes {stable_mosaic.version = 11 : i64} {
  func.func @_rowminmax_kernel(%arg0: i32, %arg1: i32, %arg2: memref<8x256xf32, #tpu.memory_space<vmem>>, %arg3: memref<8x1xf32, #tpu.memory_space<vmem>>, %arg4: memref<8x1xf32, #tpu.memory_space<vmem>>, %arg5: memref<8x256xf32, #tpu.memory_space<vmem>>, %arg6: memref<8x256xf32, #tpu.memory_space<vmem>>) attributes {dimension_semantics = [#tpu.dimension_semantics<parallel>, #tpu.dimension_semantics<arbitrary>], iteration_bounds = array<i64: 1, 1>, scalar_prefetch = 0 : i64, scratch_operands = 2 : i64, tpu.core_type = #tpu.core_type<tc>, window_params = [{transform_indices = @transform_0, window_bounds = array<i64: 8, 256>}, {transform_indices = @transform_1, window_bounds = array<i64: 8, 1>}, {transform_indices = @transform_2, window_bounds = array<i64: 8, 1>}]} {
    %c0_i32 = arith.constant 0 : i32
    %0 = arith.cmpi eq, %arg1, %c0_i32 : i32
    %1 = arith.extui %0 : i1 to i32
    %c0_i32_0 = arith.constant 0 : i32
    %2 = arith.cmpi ne, %1, %c0_i32_0 : i32
    scf.if %2 {
      %cst = arith.constant 0xFF800000 : f32
      %13 = vector.broadcast %cst : f32 to vector<8x256xf32>
      %c0_12 = arith.constant 0 : index
      %c0_13 = arith.constant 0 : index
      %14 = vector.load %arg5[%c0_12, %c0_13] : memref<8x256xf32, #tpu.memory_space<vmem>>, vector<8x256xf32>
      tpu.vector_store %arg5[%c0_12, %c0_13], %13 {strides = array<i32>} : memref<8x256xf32, #tpu.memory_space<vmem>>, vector<8x256xf32>,
      %cst_14 = arith.constant 0x7F800000 : f32
      %15 = vector.broadcast %cst_14 : f32 to vector<8x256xf32>
      %c0_15 = arith.constant 0 : index
      %c0_16 = arith.constant 0 : index
      %16 = vector.load %arg6[%c0_15, %c0_16] : memref<8x256xf32, #tpu.memory_space<vmem>>, vector<8x256xf32>
      tpu.vector_store %arg6[%c0_15, %c0_16], %15 {strides = array<i32>} : memref<8x256xf32, #tpu.memory_space<vmem>>, vector<8x256xf32>,
    } else {
    }
    %c0 = arith.constant 0 : index
    %c0_1 = arith.constant 0 : index
    %3 = vector.load %arg2[%c0, %c0_1] : memref<8x256xf32, #tpu.memory_space<vmem>>, vector<8x256xf32>
    %c0_2 = arith.constant 0 : index
    %c0_3 = arith.constant 0 : index
    %4 = vector.load %arg5[%c0_2, %c0_3] : memref<8x256xf32, #tpu.memory_space<vmem>>, vector<8x256xf32>
    %5 = arith.maximumf %4, %3 : vector<8x256xf32>
    %c0_4 = arith.constant 0 : index
    %c0_5 = arith.constant 0 : index
    %6 = vector.load %arg5[%c0_4, %c0_5] : memref<8x256xf32, #tpu.memory_space<vmem>>, vector<8x256xf32>
    tpu.vector_store %arg5[%c0_4, %c0_5], %5 {strides = array<i32>} : memref<8x256xf32, #tpu.memory_space<vmem>>, vector<8x256xf32>,
    %c0_6 = arith.constant 0 : index
    %c0_7 = arith.constant 0 : index
    %7 = vector.load %arg6[%c0_6, %c0_7] : memref<8x256xf32, #tpu.memory_space<vmem>>, vector<8x256xf32>
    %8 = arith.minimumf %7, %3 : vector<8x256xf32>
    %c0_8 = arith.constant 0 : index
    %c0_9 = arith.constant 0 : index
    %9 = vector.load %arg6[%c0_8, %c0_9] : memref<8x256xf32, #tpu.memory_space<vmem>>, vector<8x256xf32>
    tpu.vector_store %arg6[%c0_8, %c0_9], %8 {strides = array<i32>} : memref<8x256xf32, #tpu.memory_space<vmem>>, vector<8x256xf32>,
    %c0_i32_10 = arith.constant 0 : i32
    %10 = arith.cmpi eq, %arg1, %c0_i32_10 : i32
    %11 = arith.extui %10 : i1 to i32
    %c0_i32_11 = arith.constant 0 : i32
    %12 = arith.cmpi ne, %11, %c0_i32_11 : i32
    scf.if %12 {
      %c0_12 = arith.constant 0 : index
      %c0_13 = arith.constant 0 : index
      %13 = vector.load %arg5[%c0_12, %c0_13] : memref<8x256xf32, #tpu.memory_space<vmem>>, vector<8x256xf32>
      %cst = arith.constant dense<0xFF800000> : vector<8xf32>
      %14 = vector.multi_reduction <maximumf>, %13, %cst [1] : vector<8x256xf32> to vector<8xf32>
      %15 = vector.shape_cast %14 : vector<8xf32> to vector<8x1xf32>
      %c0_14 = arith.constant 0 : index
      %c0_15 = arith.constant 0 : index
      %16 = vector.load %arg3[%c0_14, %c0_15] : memref<8x1xf32, #tpu.memory_space<vmem>>, vector<8x1xf32>
      tpu.vector_store %arg3[%c0_14, %c0_15], %15 {strides = array<i32>} : memref<8x1xf32, #tpu.memory_space<vmem>>, vector<8x1xf32>,
      %c0_16 = arith.constant 0 : index
      %c0_17 = arith.constant 0 : index
      %17 = vector.load %arg6[%c0_16, %c0_17] : memref<8x256xf32, #tpu.memory_space<vmem>>, vector<8x256xf32>
      %cst_18 = arith.constant dense<0x7F800000> : vector<8xf32>
      %18 = vector.multi_reduction <minimumf>, %17, %cst_18 [1] : vector<8x256xf32> to vector<8xf32>
      %19 = vector.shape_cast %18 : vector<8xf32> to vector<8x1xf32>
      %c0_19 = arith.constant 0 : index
      %c0_20 = arith.constant 0 : index
      %20 = vector.load %arg4[%c0_19, %c0_20] : memref<8x1xf32, #tpu.memory_space<vmem>>, vector<8x1xf32>
      tpu.vector_store %arg4[%c0_19, %c0_20], %19 {strides = array<i32>} : memref<8x1xf32, #tpu.memory_space<vmem>>, vector<8x1xf32>,
    } else {
    }
    return
  }
  func.func @transform_0(%arg0: i32, %arg1: i32) -> (i32, i32) {
    %c0_i32 = arith.constant 0 : i32
    return %arg0, %arg1 : i32, i32
  }
  func.func @transform_1(%arg0: i32, %arg1: i32) -> (i32, i32) {
    %c0_i32 = arith.constant 0 : i32
    %c0_i32_0 = arith.constant 0 : i32
    return %arg0, %c0_i32 : i32, i32
  }
  func.func @transform_2(%arg0: i32, %arg1: i32) -> (i32, i32) {
    %c0_i32 = arith.constant 0 : i32
    %c0_i32_0 = arith.constant 0 : i32
    return %arg0, %c0_i32 : i32, i32
  }
}

</mosaic_0001>

<bundles_post_ra>
// kernel: tpu_custom_call.1
= control target key start
LH: loop header
LB: loop body
LE: loop exit
PB: predicated region body
PF: predicated region fallthrough
CT: control target
= control target key end

     0   :  { %8 = vsyncpa [#allocation5], 0  ;;  %s94_s9 = smov [#allocation4]   ;;  %s128_s0 = inlined_call_operand.hbm [shape: f32[8,256], index: 0, kind: input, shape index: {}]   ;;  %s129_s1 = inlined_call_operand.vmem [shape: f32[8,1], index: 1, kind: output, shape index: {0}]   ;;  %s130_s2 = inlined_call_operand.vmem [shape: f32[8,1], index: 2, kind: output, shape index: {1}]  }
   0x1   :  { %s15_s10 = sshll.u32 %s94_s9, 4  ;;  %s70_s13 = scalar_lea.hbm %s128_s0, 256  ;;  %s16_s10 = int_to_ptr.vmem [resolvable:$true] %s15_s10 }
   0x2   :  { %p71_p0 = scmp.ne.s32.totalorder %s128_s0, %s70_s13  ;;  %p74_p1 = scmp.lt.u32.totalorder %s70_s13, %s128_s0 }
   0x4   :  { %p76_p2 = pnand %p74_p1, %p71_p0 }
   0x6   :  { %79 = shalt.err (!%p76_p2)
}
   0x7   :  { %s80_s18 = scalar_lea.vmem %s16_s10, 256  ;;  %p85_p4 = scmp.lt.s32.totalorder %s16_s10, %s16_s10 }
   0x8   :  { %p81_p3 = scmp.ne.s32.totalorder %s16_s10, %s80_s18  ;;  %p86_p5 = scmp.lt.s32.totalorder %s80_s18, %s80_s18 }
   0xa   :  { %p87_p6 = por %p86_p5, %p85_p4 }
   0xc   :  { %p88_p7 = pnand %p87_p6, %p81_p3 }
   0xe   :  { %91 = shalt.err (!%p88_p7)
}
   0xf   :  { %18 = dma.hbm_to_vmem [thread:$0]  %s128_s0, 256, %s16_s10, [#allocation5]  }
  0x10   :  { %92 = dma.done.wait [#allocation5], 256  }
  0x11   :  { %93 = vsyncadd [#allocation5], 4294967040  ;;  %v30_v0 = vld [vmem:[#allocation4] sm:$0xff]  ;;  %v31_v1 = vld [vmem:[#allocation4 + $0x8] sm:$0xff]  ;;  %vm52_vm0 = vcmask 7168  }
  0x12   :  { %v49_v2 = vmax.f32 %v30_v0, %v31_v1  ;;  %v56_v3 = vmin.f32 %v30_v0, %v31_v1 }
  0x14   :  { %50 = vmax.xlane.f32.xlu0 %v49_v2 }
  0x18   :  { %57 = vmin.xlane.f32.xlu0 %v56_v3 }
  0xa1   :  { %v51_v4 = vpop.xlane.xlu0 %50 }
  0xa2   :  { %53 = vst.msk [vmem:[%s129_s1] sm:$0xff] %vm52_vm0, %v51_v4 }
  0xa5   :  { %v58_v5 = vpop.xlane.xlu0 %57 }
  0xa6   :  { %59 = vst.msk [vmem:[%s130_s2] sm:$0xff] %vm52_vm0, %v58_v5 }
  0xa7   :  { %68 = vsyncpa [#allocation5], 1 }

</bundles_post_ra>
